<compile_context>
chip_gen: v5e
topology: v5e:2x2
jax: 0.10.0
libtpu: 0.0.40
codegen_flags: <defaults>
</compile_context>

<pallas_src>
import jax
import jax.numpy as jnp
from jax.experimental import pallas as pl
from jax.experimental.pallas import tpu as pltpu


def _pos_embed_kernel(x_ref, w1_ref, c1_ref, w2_ref, b2_ref, o_ref):
    # x_ref:  (bt, C_in, tn) f32  - channels-first input tile (positions on lanes)
    # w1_ref: (F, C_in)      f32  - conv1 weight with eval-mode BN scale folded in
    # c1_ref: (F, 1)         f32  - folded conv1 bias + BN shift
    # w2_ref: (F, F)         f32  - conv2 weight
    # b2_ref: (F, 1)         f32  - conv2 bias
    # o_ref:  (bt, F, tn)         - channels-first output tile (lane-dense)
    w1 = w1_ref[...]
    c1 = c1_ref[...]
    w2 = w2_ref[...]
    b2 = b2_ref[...]
    for i in range(x_ref.shape[0]):          # static, small batch tile
        x = x_ref[i]                          # (C_in, tn)
        # Conv1d #1 (k=1) + folded BN: (F, C_in) @ (C_in, tn) -> (F, tn).
        h = jnp.dot(w1, x, preferred_element_type=jnp.float32)
        h = jnp.maximum(h + c1, 0.0)          # bias + BN shift + ReLU
        # Conv1d #2 (k=1): (F, F) @ (F, tn) -> (F, tn).
        out = jnp.dot(w2, h, preferred_element_type=jnp.float32)
        o_ref[i] = (out + b2).astype(o_ref.dtype)


def _pick_tile_n(n_pad, num_feats, out_bytes):
    """Largest lane-aligned position tile within an ~8 MiB double-buffer budget."""
    budget = 8 * 1024 * 1024
    cap = budget // (2 * num_feats * out_bytes)        # double-buffered out tile
    cap = max(512, min(8192, (cap // 128) * 128))
    if n_pad <= cap:
        return n_pad
    # Prefer a tile that divides n_pad exactly (no masked partial stores) ...
    t = cap
    while t >= max(128, cap // 2):
        if n_pad % t == 0:
            return t
        t -= 128
    # ... otherwise take the largest tile and let only the final tile be partial.
    return cap


def _pick_tile_b(batch, n_tiles, num_feats, tn, out_bytes):
    """Fold several batches into one grid step when N fits in a single tile."""
    if n_tiles > 1 or batch <= 2:
        return 1
    target = 1 << 20                                    # ~1 MiB of output per step
    best = 1
    for cand in range(2, batch + 1):
        if batch % cand != 0:
            continue
        if batch // cand < 2:                           # keep >=2 steps (v7x megacore)
            continue
        if cand * num_feats * tn * out_bytes <= target:
            best = cand
    return best


def position_embedding_learned(xyz, params, *, out_dtype=jnp.float32,
                               tile_n=None, tile_b=None):
    """xyz: (B, N, C_in) float32.  Returns (B, F, N), matching the PyTorch output."""
    B, N, C_in = xyz.shape
    w1, b1 = params["w1"], params["b1"]                 # (F, C_in), (F,)
    gamma, beta = params["gamma"], params["beta"]       # (F,), (F,)
    mean, var, eps = params["mean"], params["var"], params["eps"]
    w2, b2 = params["w2"], params["b2"]                 # (F, F), (F,)
    F = w1.shape[0]

    # Fold eval-mode BatchNorm + conv1 bias into conv1's weight/bias.
    # TODO(synk): training-mode BN (batch statistics) is not reproduced.
    scale = (gamma / jnp.sqrt(var + eps)).astype(jnp.float32)            # (F,)
    w1_folded = w1.astype(jnp.float32) * scale[:, None]                  # (F, C_in)
    c1 = b1.astype(jnp.float32) * scale + beta - mean * scale            # (F,)

    # Channels-first, lane-aligned input.  x stays f32: input traffic is tiny
    # next to the output write, and bf16 would quantize raw coordinates.
    n_pad = ((N + 127) // 128) * 128
    x_cf = jnp.transpose(xyz.astype(jnp.float32), (0, 2, 1))             # (B, C_in, N)
    if n_pad != N:
        x_cf = jnp.pad(x_cf, ((0, 0), (0, 0), (0, n_pad - N)))

    out_bytes = jnp.dtype(out_dtype).itemsize
    tn = _pick_tile_n(n_pad, F, out_bytes) if tile_n is None else tile_n
    n_tiles = pl.cdiv(n_pad, tn)
    bt = _pick_tile_b(B, n_tiles, F, tn, out_bytes) if tile_b is None else tile_b
    grid = (pl.cdiv(B, bt), n_tiles)

    x_spec = pl.BlockSpec((bt, C_in, tn), lambda b, n: (b, 0, n))
    w1_spec = pl.BlockSpec((F, C_in), lambda b, n: (0, 0))   # resident across steps
    c1_spec = pl.BlockSpec((F, 1), lambda b, n: (0, 0))
    w2_spec = pl.BlockSpec((F, F), lambda b, n: (0, 0))
    b2_spec = pl.BlockSpec((F, 1), lambda b, n: (0, 0))
    out_spec = pl.BlockSpec((bt, F, tn), lambda b, n: (b, 0, n))

    cost = pl.CostEstimate(
        flops=2 * B * N * F * (C_in + F),
        transcendentals=0,
        bytes_accessed=(B * n_pad * C_in * 4                 # x read (f32)
                        + B * F * n_pad * out_bytes          # output write
                        + (F * C_in + F * F + 2 * F) * 4),   # weights + biases
    )

    out = pl.pallas_call(
        _pos_embed_kernel,
        out_shape=jax.ShapeDtypeStruct((B, F, n_pad), out_dtype),
        grid=grid,
        in_specs=[x_spec, w1_spec, c1_spec, w2_spec, b2_spec],
        out_specs=out_spec,
        compiler_params=pltpu.CompilerParams(
            dimension_semantics=("parallel", "parallel"),
            vmem_limit_bytes=32 * 1024 * 1024),              # safe on v7x (64 MiB phys)
        cost_estimate=cost,
    )(
        x_cf,
        w1_folded,
        c1.reshape(F, 1),
        w2.astype(jnp.float32),
        b2.astype(jnp.float32).reshape(F, 1),
    )

    if n_pad != N:
        out = out[:, :, :N]
    return out


def _reference(xyz, params):
    """Pure-JAX f32 reference mirroring the PyTorch forward (eval-mode BN)."""
    w1, b1 = params["w1"], params["b1"]
    w2, b2 = params["w2"], params["b2"]
    gamma, beta = params["gamma"], params["beta"]
    mean, var, eps = params["mean"], params["var"], params["eps"]
    x = jnp.einsum("bnc,fc->bfn", xyz, w1) + b1[None, :, None]
    x = (x - mean[None, :, None]) / jnp.sqrt(var[None, :, None] + eps)
    x = x * gamma[None, :, None] + beta[None, :, None]
    x = jnp.maximum(x, 0.0)
    x = jnp.einsum("bfn,gf->bgn", x, w2) + b2[None, :, None]
    return x


def _make_params(key, input_channel, num_pos_feats):
    keys = jax.random.split(key, 8)
    return {
        "w1": 0.1 * jax.random.normal(keys[0], (num_pos_feats, input_channel),
                                      dtype=jnp.float32),
        "b1": 0.1 * jax.random.normal(keys[1], (num_pos_feats,), dtype=jnp.float32),
        "gamma": 1.0 + 0.05 * jax.random.normal(keys[2], (num_pos_feats,),
                                                dtype=jnp.float32),
        "beta": 0.05 * jax.random.normal(keys[3], (num_pos_feats,), dtype=jnp.float32),
        "mean": 0.1 * jax.random.normal(keys[4], (num_pos_feats,), dtype=jnp.float32),
        "var": jnp.abs(1.0 + 0.05 * jax.random.normal(keys[5], (num_pos_feats,),
                                                      dtype=jnp.float32)),
        "eps": 1e-5,
        "w2": 0.1 * jax.random.normal(keys[6], (num_pos_feats, num_pos_feats),
                                      dtype=jnp.float32),
        "b2": 0.1 * jnp.ones((num_pos_feats,), dtype=jnp.float32),
    }


if __name__ == "__main__":
    input_channel = 4
    num_pos_feats = 32

    key = jax.random.PRNGKey(0)
    k_param, k_x1, k_x2 = jax.random.split(key, 3)
    params = _make_params(k_param, input_channel, num_pos_feats)

    # Case 1: lane-aligned N (B=2, N=256).
    B, N = 2, 256
    xyz = jax.random.normal(k_x1, (B, N, input_channel), dtype=jnp.float32)
    ref = _reference(xyz, params)

    out_f32 = jax.block_until_ready(
        position_embedding_learned(xyz, params, out_dtype=jnp.float32))
    assert out_f32.shape == (B, num_pos_feats, N), out_f32.shape
    assert jnp.allclose(out_f32, ref, atol=2e-2, rtol=2e-2), "f32-out mismatch"

    # Fast path: bf16 output halves the dominant HBM write traffic.
    out_bf16 = jax.block_until_ready(
        position_embedding_learned(xyz, params, out_dtype=jnp.bfloat16))
    assert out_bf16.shape == (B, num_pos_feats, N), out_bf16.shape
    assert jnp.allclose(out_bf16.astype(jnp.float32), ref,
                        atol=5e-2, rtol=5e-2), "bf16-out mismatch"

    # Case 2: non-multiple-of-128 N exercises the pad + slice path.
    B2, N2 = 3, 200
    xyz2 = jax.random.normal(k_x2, (B2, N2, input_channel), dtype=jnp.float32)
    ref2 = _reference(xyz2, params)
    out2 = jax.block_until_ready(
        position_embedding_learned(xyz2, params, out_dtype=jnp.float32))
    assert out2.shape == (B2, num_pos_feats, N2), out2.shape
    assert jnp.allclose(out2, ref2, atol=2e-2, rtol=2e-2), "padded-N mismatch"

    print("KERNEL_OK")
</pallas_src>

<mosaic_0001>
module attributes {stable_mosaic.version = 11 : i64} {
  func.func @_pos_embed_kernel(%arg0: i32, %arg1: i32, %arg2: memref<1x4x256xf32, #tpu.memory_space<vmem>>, %arg3: memref<32x4xf32, #tpu.memory_space<vmem>>, %arg4: memref<32x1xf32, #tpu.memory_space<vmem>>, %arg5: memref<32x32xf32, #tpu.memory_space<vmem>>, %arg6: memref<32x1xf32, #tpu.memory_space<vmem>>, %arg7: memref<1x32x256xf32, #tpu.memory_space<vmem>>) attributes {dimension_semantics = [#tpu.dimension_semantics<parallel>, #tpu.dimension_semantics<parallel>], iteration_bounds = array<i64: 2, 1>, scalar_prefetch = 0 : i64, scratch_operands = 0 : i64, tpu.core_type = #tpu.core_type<tc>, window_params = [{transform_indices = @transform_0, window_bounds = array<i64: 1, 4, 256>}, {pipeline_mode = #tpu.pipeline_mode<synchronous>, transform_indices = @transform_1, window_bounds = array<i64: 32, 4>}, {pipeline_mode = #tpu.pipeline_mode<synchronous>, transform_indices = @transform_2, window_bounds = array<i64: 32, 1>}, {pipeline_mode = #tpu.pipeline_mode<synchronous>, transform_indices = @transform_3, window_bounds = array<i64: 32, 32>}, {pipeline_mode = #tpu.pipeline_mode<synchronous>, transform_indices = @transform_4, window_bounds = array<i64: 32, 1>}, {transform_indices = @transform_5, window_bounds = array<i64: 1, 32, 256>}]} {
    %c0 = arith.constant 0 : index
    %c0_0 = arith.constant 0 : index
    %0 = vector.load %arg3[%c0, %c0_0] : memref<32x4xf32, #tpu.memory_space<vmem>>, vector<32x4xf32>
    %c0_1 = arith.constant 0 : index
    %c0_2 = arith.constant 0 : index
    %1 = vector.load %arg4[%c0_1, %c0_2] : memref<32x1xf32, #tpu.memory_space<vmem>>, vector<32x1xf32>
    %c0_3 = arith.constant 0 : index
    %c0_4 = arith.constant 0 : index
    %2 = vector.load %arg5[%c0_3, %c0_4] : memref<32x32xf32, #tpu.memory_space<vmem>>, vector<32x32xf32>
    %c0_5 = arith.constant 0 : index
    %c0_6 = arith.constant 0 : index
    %3 = vector.load %arg6[%c0_5, %c0_6] : memref<32x1xf32, #tpu.memory_space<vmem>>, vector<32x1xf32>
    %c0_7 = arith.constant 0 : index
    %c0_8 = arith.constant 0 : index
    %c0_9 = arith.constant 0 : index
    %4 = vector.load %arg2[%c0_7, %c0_8, %c0_9] : memref<1x4x256xf32, #tpu.memory_space<vmem>>, vector<1x4x256xf32>
    %5 = vector.shape_cast %4 : vector<1x4x256xf32> to vector<4x256xf32>
    %cst = arith.constant dense<0.000000e+00> : vector<32x256xf32>
    %6 = tpu.matmul %0, %5, %cst {dimension_numbers = #tpu.dot_dimension_numbers<[1], [0], [0], [1], [0, 0, 1, 1], [], []>} : vector<32x4xf32>, vector<4x256xf32>, vector<32x256xf32> -> vector<32x256xf32>
    %7 = vector.broadcast %1 : vector<32x1xf32> to vector<32x256xf32>
    %8 = arith.addf %6, %7 : vector<32x256xf32>
    %cst_10 = arith.constant 0.000000e+00 : f32
    %9 = vector.broadcast %cst_10 : f32 to vector<32x256xf32>
    %10 = arith.maximumf %8, %9 : vector<32x256xf32>
    %cst_11 = arith.constant dense<0.000000e+00> : vector<32x256xf32>
    %11 = tpu.matmul %2, %10, %cst_11 {dimension_numbers = #tpu.dot_dimension_numbers<[1], [0], [0], [1], [0, 0, 1, 1], [], []>} : vector<32x32xf32>, vector<32x256xf32>, vector<32x256xf32> -> vector<32x256xf32>
    %12 = vector.broadcast %3 : vector<32x1xf32> to vector<32x256xf32>
    %13 = arith.addf %11, %12 : vector<32x256xf32>
    %c0_12 = arith.constant 0 : index
    %c0_13 = arith.constant 0 : index
    %c0_14 = arith.constant 0 : index
    %14 = vector.load %arg7[%c0_12, %c0_13, %c0_14] : memref<1x32x256xf32, #tpu.memory_space<vmem>>, vector<1x32x256xf32>
    %15 = vector.shape_cast %14 : vector<1x32x256xf32> to vector<32x256xf32>
    %16 = vector.shape_cast %13 : vector<32x256xf32> to vector<1x32x256xf32>
    tpu.vector_store %arg7[%c0_12, %c0_13, %c0_14], %16 {strides = array<i32>} : memref<1x32x256xf32, #tpu.memory_space<vmem>>, vector<1x32x256xf32>,
    return
  }
  func.func @transform_0(%arg0: i32, %arg1: i32) -> (i32, i32, i32) {
    %c0_i32 = arith.constant 0 : i32
    %c0_i32_0 = arith.constant 0 : i32
    return %arg0, %c0_i32, %arg1 : i32, i32, i32
  }
  func.func @transform_1(%arg0: i32, %arg1: i32) -> (i32, i32) {
    %c0_i32 = arith.constant 0 : i32
    %c0_i32_0 = arith.constant 0 : i32
    %c0_i32_1 = arith.constant 0 : i32
    return %c0_i32, %c0_i32_0 : i32, i32
  }
  func.func @transform_2(%arg0: i32, %arg1: i32) -> (i32, i32) {
    %c0_i32 = arith.constant 0 : i32
    %c0_i32_0 = arith.constant 0 : i32
    %c0_i32_1 = arith.constant 0 : i32
    return %c0_i32, %c0_i32_0 : i32, i32
  }
  func.func @transform_3(%arg0: i32, %arg1: i32) -> (i32, i32) {
    %c0_i32 = arith.constant 0 : i32
    %c0_i32_0 = arith.constant 0 : i32
    %c0_i32_1 = arith.constant 0 : i32
    return %c0_i32, %c0_i32_0 : i32, i32
  }
  func.func @transform_4(%arg0: i32, %arg1: i32) -> (i32, i32) {
    %c0_i32 = arith.constant 0 : i32
    %c0_i32_0 = arith.constant 0 : i32
    %c0_i32_1 = arith.constant 0 : i32
    return %c0_i32, %c0_i32_0 : i32, i32
  }
  func.func @transform_5(%arg0: i32, %arg1: i32) -> (i32, i32, i32) {
    %c0_i32 = arith.constant 0 : i32
    %c0_i32_0 = arith.constant 0 : i32
    return %arg0, %c0_i32, %arg1 : i32, i32, i32
  }
}

</mosaic_0001>

<bundles_post_ra>
// kernel: tpu_custom_call.1
= control target key start
LH: loop header
LB: loop body
LE: loop exit
PB: predicated region body
PF: predicated region fallthrough
CT: control target
= control target key end

     0   :  { %10 = vsyncpa [#allocation3], 0  ;;  %s939_s0 = inlined_call_operand.vmem [shape: f32[2,4,256], index: 0, kind: input, shape index: {}]   ;;  %s940_s1 = inlined_call_operand.vmem [shape: f32[32,4], index: 1, kind: input, shape index: {}]   ;;  %s941_s2 = inlined_call_operand.vmem [shape: f32[32,1], index: 2, kind: input, shape index: {}]   ;;  %s942_s3 = inlined_call_operand.vmem [shape: f32[32,32], index: 3, kind: input, shape index: {}]   ;;  %s943_s4 = inlined_call_operand.vmem [shape: f32[32,1], index: 4, kind: input, shape index: {}]   ;;  %s944_s5 = inlined_call_operand.hbm [shape: f32[2,32,256], index: 5, kind: output, shape index: {}]  }
   0x1   :  { %12 = vsyncpa [#allocation3 + $0x1], 0  ;;  %s782_s18 = smov 0   ;;  %s784_s19 = smov 0  }
   0x2   :  { %s786_s20 = smov 0   ;;  %s788_s21 = smov 0  }
   0x3   :  { %s790_s22 = smov 0   ;;  %s792_s23 = smov 0  }
   0x4 LB: > { %s575_s24 = sadd.s32 4294967295, %s747_s23   ;;  %s576_s25 = sadd.s32 4294967294, %s747_s23   ;;  %s747_s23 = sphi %s792_s23, %s18_s23   ;;  %s743_s22 = sphi %s790_s22, %s951_s22   ;;  %s739_s21 = sphi %s788_s21, %s950_s21   ;;  %s735_s20 = sphi %s786_s20, %s949_s20   ;;  %s731_s19 = sphi %s784_s19, %s948_s19   ;;  %s727_s18 = sphi %s782_s18, %s947_s18  }
   0x5   : > { %s30_s26 = sadd.s32 1, %s743_s22  ;;  %s151_s27 = sadd.s32 1, %s735_s20 }
   0x6   : > { %p32_p0 = scmp.ge.s32.totalorder %s30_s26, 2  ;;  %p161_p1 = scmp.ne.s32.totalorder %s735_s20, %s731_s19 }
   0x7   : > { %p162_p2 = scmp.eq.s32.totalorder %s575_s24, 1  ;;  %p167_p3 = scmp.ne.s32.totalorder %s731_s19, %s727_s18 }
   0x8   : > { %s953_s26 = smov (%p32_p0, %s30_s26), 0  ;;  %p168_p5 = scmp.eq.s32.totalorder %s576_s25, 1 }
   0x9   : > { %p822_p4 = por %p162_p2, %p161_p1  ;;  %s146_s29 = ssub.s32 %s743_s22, %s953_s26 }
   0xa   : > { %p579_p6 = scmp.ge.s32.totalorder %s747_s23, 1  ;;  %p149_p7 = scmp.eq.s32.totalorder %s146_s29, 0 }
   0xb   : > { %p829_p8 = por %p168_p5, %p167_p3  ;;  %p211_p9 = scmp.lt.s32.totalorder %s747_s23, 3 }
   0xc   : > { %s835_s6 = scalar_select %p149_p7, %s735_s20, %s151_s27  }
   0xd   : > { %p212_p10 = pnand %p579_p6, %p211_p9 }
   0xe   : > { %p244_p11 = scmp.lt.s32.totalorder (!%p212_p10), %s739_s21, 1  ;;  %s240_s14 = sand.u32 (!%p212_p10), 1, %s731_s19  }
   0xf   : > { %215 = sbr.rel (%p212_p10) target bundleno = 358 (0x166), region = 40  ;;  %s607_s17 = sshll.u32 (!%p212_p10), %s739_s21, 6 }
  0x10   : > { %s492_s27 = scalar_lea.hbm (!%p212_p10), %s944_s5, %s607_s17 }
  0x11   : > { %s495_s7 = sshll.u32 (!%p212_p10), %s492_s27, 4  ;;  %s496_s7 = int_to_ptr.hbm [resolvable:$true] %s495_s7 }
  0x12   : > { %s683_s8 = sshra.s32 (!%p212_p10), %s496_s7, 4  ;;  %s684_s8 = int_to_ptr.hbm [resolvable:$true] %s683_s8 }
  0x13   : > { %s685_s9 = scalar_lea.hbm (!%p212_p10), %s684_s8, 64  ;;  %p690_p1 = scmp.lt.s32.totalorder (!%p212_p10), %s684_s8, %s944_s5 }
  0x14   : > { %v259_v0 = vld [vmem:[%s941_s2 + $0x8] sm:$0xff]  ;;  %v749_v1 = vmov 0   ;;  %v261_v2 = vld [vmem:[%s941_s2 + $0x18] sm:$0xff]  ;;  %s245_s11 = scalar_select %p244_p11, %s739_s21, 1  ;;  %v258_v4 = vld [vmem:[%s941_s2] sm:$0xff]  ;;  %vm308_vm0 = vcmask 1043456  }
  0x15   : > { %667 = vset.pattern.permute.xlu1 %v749_v1  ;;  %666 = vset.pattern.permute.xlu0 %v749_v1  ;;  %v260_v5 = vld [vmem:[%s941_s2 + $0x10] sm:$0xff]  ;;  %v254_v6 = vld [vmem:[%s940_s1] sm:$0xff]  ;;  %vm295_vm1 = vcmask 31744   ;;  %v269_v10 = vld [vmem:[%s943_s4 + $0x18] sm:$0xff]  ;;  %vm399_vm2 = vcmask 261120   ;;  %s479_s21 = scalar_lea.sflag [#allocation3], %s240_s14  ;;  %p686_p12 = scmp.ne.s32.totalorder %s684_s8, %s685_s9 }
  0x16   : > { %278 = vperm.xlu1 %667, %v259_v0   ;;  %288 = vperm.xlu0 %666, %v261_v2   ;;  %s606_s12 = sshll.u32 %s245_s11, 3  ;;  %v268_v9 = vld [vmem:[%s943_s4 + $0x10] sm:$0xff]  ;;  %v255_v11 = vld [vmem:[%s940_s1 + $0x8] sm:$0xff]  ;;  %v257_v13 = vld [vmem:[%s940_s1 + $0x18] sm:$0xff] }
  0x17   : > { %668 = vset.pattern.permute.xlu2 %v749_v1  ;;  %s251_s15 = scalar_lea.vmem %s939_s0, %s606_s12  ;;  %v256_v12 = vld [vmem:[%s940_s1 + $0x10] sm:$0xff]  ;;  %v266_v34 = vld [vmem:[%s943_s4] sm:$0xff]  ;;  %v267_v44 = vld [vmem:[%s943_s4 + $0x8] sm:$0xff]  ;;  %p687_p13 = pnand %p686_p12, %p822_p4 }
  0x18   : > { %v270_v3 = vld [vmem:[%s251_s15] sm:$0xff]  ;;  %381 = vperm.xlu2 %668, %v266_v34   ;;  %v263_v45 = vld [vmem:[%s942_s3 + $0x8] sm:$0xff]  ;;  %v264_v46 = vld [vmem:[%s942_s3 + $0x10] sm:$0xff]  ;;  %s580_s15 = sshll.u32 %s240_s14, 6  ;;  %s689_s12 = scalar_lea.hbm %s944_s5, 128 }
  0x19   : > { %292 = vst [vmem:[#allocation1] ss:$2 sm:$0xff] %v270_v3  ;;  %v262_v43 = vld [vmem:[%s942_s3] sm:$0xff]  ;;  %v265_v47 = vld [vmem:[%s942_s3 + $0x18] sm:$0xff]  ;;  %s242_s16 = scalar_lea.vmem [#allocation2], %s580_s15  ;;  %p688_p0 = pneg %p687_p13 }
  0x1a   : > { %s493_s29 = sshll.u32 %s242_s16, 4  ;;  %p691_p2 = scmp.lt.s32.totalorder %s689_s12, %s685_s9  ;;  %s494_s29 = int_to_ptr.vmem [resolvable:$true] %s493_s29 }
  0x1c   : > { %p692_p3 = por %p691_p2, %p690_p1 }
  0x1e   : > { %273 = vperm.xlu1 %667, %v258_v4   ;;  %283 = vperm.xlu0 %666, %v260_v5   ;;  %p693_p5 = pnand %p692_p3, %p688_p0 }
  0x20   : > { %v293_v7 = vld.sshfl [vmem:[#allocation1] sm:$0xff pattern:$0x75316420]  ;;  %v294_v8 = vld.sshfl [vmem:[#allocation1 + $0x8] sm:$0xff pattern:$0x75316420]  ;;  %386 = vperm.xlu2 %668, %v267_v44  }
  0x21   : > { %583 = vmatpush.msk.msra.mxu0 %vm308_vm0, %v293_v7  ;;  %588 = vmatpush.msk.msra.mxu1 %vm308_vm0, %v294_v8 }
  0x22   : > { %584 = vmatmul.msk.f32.vlgmr.msra.gmra.mxu0 %vm295_vm1, %v254_v6  ;;  %589 = vmatmul.msk.f32.vlgmr.msra.gmra.mxu1 %vm295_vm1, %v254_v6 }
  0x26   : > { %391 = vperm.xlu0 %666, %v268_v9   ;;  %396 = vperm.xlu1 %667, %v269_v10  }
  0x2a   : > { %585 = vmatmul.msk.f32.gmra.mxu0 %vm295_vm1, %v255_v11  ;;  %590 = vmatmul.msk.f32.gmra.mxu1 %vm295_vm1, %v255_v11 }
  0x32   : > { %586 = vmatmul.msk.f32.gmra.mxu0 %vm295_vm1, %v256_v12  ;;  %591 = vmatmul.msk.f32.gmra.mxu1 %vm295_vm1, %v256_v12 }
  0x3a   : > { %587 = vmatmul.msk.f32.gmra.mxu0 %vm295_vm1, %v257_v13  ;;  %592 = vmatmul.msk.f32.gmra.mxu1 %vm295_vm1, %v257_v13 }
  0x72   : > { %v382_v48 = vpop.permute.xlu2 %381 }
  0x7a   : > { %v387_v53 = vpop.permute.xlu2 %386 }
  0x88   : > { %v289_v18 = vpop.permute.xlu0 %288  ;;  %v279_v19 = vpop.permute.xlu1 %278 }
  0x90   : > { %v284_v22 = vpop.permute.xlu0 %283  ;;  %v274_v29 = vpop.permute.xlu1 %273 }
  0x98   : > { %v392_v58 = vpop.permute.xlu0 %391  ;;  %v397_v63 = vpop.permute.xlu1 %396 }
  0x9f   : > { %v330_v14 = vpop.f32.mrf.mxu0  ;;  %v359_v15 = vpop.f32.mrf.mxu1 }
  0xa0   : > { %v331_v35 = vadd.f32 %v330_v14, %v274_v29  ;;  %v360_v36 = vadd.f32 %v359_v15, %v274_v29 }
  0xa2   : > { %v371_v41 = vmax.f32 %v331_v35, 0.0  ;;  %v372_v42 = vmax.f32 %v360_v36, 0.0 }
  0xa7   : > { %v333_v16 = vpop.f32.mrf.mxu0  ;;  %v362_v17 = vpop.f32.mrf.mxu1 }
  0xa8   : > { %v334_v30 = vadd.f32 %v333_v16, %v279_v19  ;;  %v363_v31 = vadd.f32 %v362_v17, %v279_v19 }
  0xaa   : > { %v373_v39 = vmax.f32 %v334_v30, 0.0  ;;  %v374_v40 = vmax.f32 %v363_v31, 0.0 }
  0xaf   : > { %v336_v20 = vpop.f32.mrf.mxu0  ;;  %v365_v21 = vpop.f32.mrf.mxu1 }
  0xb0   : > { %v337_v25 = vadd.f32 %v336_v20, %v284_v22  ;;  %v366_v26 = vadd.f32 %v365_v21, %v284_v22 }
  0xb2   : > { %v375_v37 = vmax.f32 %v337_v25, 0.0  ;;  %v376_v38 = vmax.f32 %v366_v26, 0.0 }
  0xb7   : > { %v339_v23 = vpop.f32.mrf.mxu0  ;;  %v368_v24 = vpop.f32.mrf.mxu1 }
  0xb8   : > { %v340_v27 = vadd.f32 %v339_v23, %v289_v18  ;;  %v369_v28 = vadd.f32 %v368_v24, %v289_v18 }
  0xba   : > { %v377_v32 = vmax.f32 %v340_v27, 0.0  ;;  %v378_v33 = vmax.f32 %v369_v28, 0.0 }
  0xbc   : > { %424 = vmatpush.msra.mxu2 %v377_v32  ;;  %453 = vmatpush.msra.mxu3 %v378_v33 }
  0xbe   : > { %425 = vmatpush.msra.mxu2 %v375_v37  ;;  %454 = vmatpush.msra.mxu3 %v376_v38 }
  0xc0   : > { %426 = vmatpush.msra.mxu2 %v373_v39  ;;  %455 = vmatpush.msra.mxu3 %v374_v40 }
  0xc2   : > { %427 = vmatpush.msra.mxu2 %v371_v41  ;;  %456 = vmatpush.msra.mxu3 %v372_v42 }
  0xc3   : > { %593 = vmatmul.msk.f32.vlgmr.msra.gmra.mxu2 %vm399_vm2, %v262_v43  ;;  %597 = vmatmul.msk.f32.vlgmr.msra.gmra.mxu3 %vm399_vm2, %v262_v43 }
  0xcb   : > { %594 = vmatmul.msk.f32.gmra.mxu2 %vm399_vm2, %v263_v45  ;;  %598 = vmatmul.msk.f32.gmra.mxu3 %vm399_vm2, %v263_v45 }
  0xd3   : > { %595 = vmatmul.msk.f32.gmra.mxu2 %vm399_vm2, %v264_v46  ;;  %599 = vmatmul.msk.f32.gmra.mxu3 %vm399_vm2, %v264_v46 }
  0xdb   : > { %596 = vmatmul.msk.f32.gmra.mxu2 %vm399_vm2, %v265_v47  ;;  %600 = vmatmul.msk.f32.gmra.mxu3 %vm399_vm2, %v265_v47 }
 0x146   : > { %v429_v49 = vpop.f32.mrf.mxu2  ;;  %v458_v50 = vpop.f32.mrf.mxu3 }
 0x147   : > { %v430_v51 = vadd.f32 %v429_v49, %v382_v48  ;;  %v459_v52 = vadd.f32 %v458_v50, %v382_v48 }
 0x149   : > { %470 = vst [vmem:[%s242_s16] sm:$0xff] %v430_v51 }
 0x14a   : > { %471 = vst [vmem:[%s242_s16 + $0x8] sm:$0xff] %v459_v52 }
 0x14e   : > { %v432_v54 = vpop.f32.mrf.mxu2  ;;  %v461_v55 = vpop.f32.mrf.mxu3 }
 0x14f   : > { %v433_v56 = vadd.f32 %v432_v54, %v387_v53  ;;  %v462_v57 = vadd.f32 %v461_v55, %v387_v53 }
 0x151   : > { %472 = vst [vmem:[%s242_s16 + $0x10] sm:$0xff] %v433_v56 }
 0x152   : > { %473 = vst [vmem:[%s242_s16 + $0x18] sm:$0xff] %v462_v57 }
 0x156   : > { %v435_v59 = vpop.f32.mrf.mxu2  ;;  %v464_v60 = vpop.f32.mrf.mxu3 }
 0x157   : > { %v436_v61 = vadd.f32 %v435_v59, %v392_v58  ;;  %v465_v62 = vadd.f32 %v464_v60, %v392_v58 }
 0x159   : > { %474 = vst [vmem:[%s242_s16 + $0x20] sm:$0xff] %v436_v61 }
 0x15a   : > { %475 = vst [vmem:[%s242_s16 + $0x28] sm:$0xff] %v465_v62 }
 0x15e   : > { %v438_v0 = vpop.f32.mrf.mxu2  ;;  %v467_v1 = vpop.f32.mrf.mxu3 }
 0x15f   : > { %v439_v2 = vadd.f32 %v438_v0, %v397_v63  ;;  %v468_v3 = vadd.f32 %v467_v1, %v397_v63 }
 0x161   : > { %476 = vst [vmem:[%s242_s16 + $0x30] sm:$0xff] %v439_v2 }
 0x162   : > { %477 = vst [vmem:[%s242_s16 + $0x38] sm:$0xff] %v468_v3 }
 0x163   : > { %696 = shalt.err (!%p693_p5)
}
 0x164   : > { %s750_s14 = smov 256   ;;  %s751_s16 = smov 16  }
 0x165   : > { %608 = dma.vmem_to_hbm [thread:$0]  (%p822_p4), %s494_s29, 1024, %s496_s7, %s479_s21, %s750_s14, %s750_s14, %s751_s16  }
 0x166 PF: > { %p614_p6 = scmp.ge.s32.totalorder %s747_s23, 2  ;;  %s510_s17 = sand.u32 1, %s727_s18  }
 0x167   : > { %s511_s24 = scalar_lea.sflag [#allocation3], %s510_s17 }
 0x168   : > { %p611_p7 = pnand %p614_p6, %p829_p8 }
 0x16a   : > { %p612_p9 = pneg %p611_p7 }
 0x16c   : > { %722 = dma.done.wait (%p612_p9), %s511_s24, 1024  }
 0x16d   : > { %724 = vsyncadd (%p612_p9), %s511_s24, 4294966272  ;;  %s18_s23 = sadd.s32 1, %s747_s23   ;;  %s947_s18 = smov %s731_s19 }
 0x16e   : > { %p15_p10 = scmp.ge.s32.totalorder %s18_s23, 4   ;;  %s948_s19 = smov %s735_s20 }
 0x16f   : > { %s949_s20 = smov %s835_s6  ;;  %s950_s21 = smov %s743_s22 }
 0x170   : > { %s951_s22 = smov %s953_s26  ;;  %17 = sbr.rel (!%p15_p10) target bundleno = 4 (0x4), region = 75 }
 0x175   :  { %517 = vsyncpa [#allocation3], 1 }
 0x176   :  { %519 = vsyncpa [#allocation3 + $0x1], 1 }

</bundles_post_ra>
